<compile_context>
chip_gen: v5e
topology: v5e:2x2
jax: 0.10.0
libtpu: 0.0.40
codegen_flags: <defaults>
</compile_context>

<pallas_src>
import jax
import jax.numpy as jnp
from jax.experimental import pallas as pl
from jax.experimental.pallas import tpu as pltpu


def _round_up(x, m):
    return (x + m - 1) // m * m


def _cdiv(a, b):
    return (a + b - 1) // b


def _vmem_capacity_bytes():
    try:
        return int(pltpu.get_tpu_info().vmem_capacity_bytes)
    except Exception:
        return 64 << 20  # conservative default (v7x per-core VMEM)


def _make_kernel(M, TM, tiles_per_core):
    def kernel(y_ref, db_ref, alpha_ref, db0_ref, out_ref):
        c = pl.program_id(0)   # core-split index ("parallel")
        i = pl.program_id(1)   # M-tile index within this split ("arbitrary")

        # The output block (c, :, :) is resident across this split's whole
        # tile loop (constant block index) -> use it as the accumulator.
        @pl.when(i == 0)
        def _init():
            out_ref[...] = jnp.zeros_like(out_ref)

        # Row-validity mask.  Handles (a) the remainder rows of the last tile
        # (arrays are NOT padded; Pallas leaves OOB rows as garbage) and
        # (b) the duplicated tile the second split reads when the tile count
        # is odd (its index_map is clamped, so all its rows are >= M).
        row0 = (c * tiles_per_core + i) * TM
        row_ids = row0 + jax.lax.broadcasted_iota(jnp.int32, (TM, 1), 0)
        valid = row_ids < M

        # Residual of this tile: Y - Db @ alpha  (MXU, f32 accumulate).
        pred = jnp.dot(db_ref[...], alpha_ref[...],
                       preferred_element_type=jnp.float32)
        resid = y_ref[...] - pred

        # Per-step L1 partial sums: abs/select on the VPU, reduce on the XLU
        # (both units have slack — the loop is HBM-DMA bound).
        s1 = jnp.sum(jnp.where(valid, jnp.abs(resid), 0.0))
        s3 = jnp.sum(jnp.where(valid, jnp.abs(db_ref[...] - db0_ref[...]), 0.0))

        lane = jax.lax.broadcasted_iota(jnp.int32, out_ref.shape, 2)
        out_ref[...] = out_ref[...] + jnp.where(
            lane == 0, s1, jnp.where(lane == 1, s3, jnp.float32(0.0)))

    return kernel


def loss_all(Y, Db, alpha, Db0, *, max_tm=None):
    """Pallas-backed equivalent of Loss_all.forward (plus explicit Db0)."""
    M, N = Y.shape
    Mk, K = Db.shape
    assert Mk == M and alpha.shape == (K, N) and Db0.shape == (M, K)

    f32 = jnp.float32
    Y = Y.astype(f32)
    Db = Db.astype(f32)
    alpha = alpha.astype(f32)
    Db0 = Db0.astype(f32)

    # ---- generation-aware VMEM budget & M-tile size -------------------------
    vmem_cap = _vmem_capacity_bytes()
    budget = min(vmem_cap * 3 // 4, 100 << 20)   # ~48 MiB v7x, ~96 MiB v5e/v6e

    # Lane/sublane-padded footprints of the VMEM tiles (what actually occupies
    # VMEM, even though the logical/HBM shapes stay unpadded).
    K_l = _round_up(K, 128)
    N_l = _round_up(N, 128)
    K_s = _round_up(K, 8)

    fixed = (2 * K_s * N_l * 4        # alpha (whole array, double-buffered)
             + 4 * 8 * 128 * 4        # output blocks
             + (4 << 20))             # compiler-internal scratch headroom
    stream_budget = max(budget - fixed, 1 << 20)

    per_row_vmem = 4 * (N_l + 2 * K_l)           # Y + Db + Db0, per row, f32
    tm = stream_budget // (2 * per_row_vmem)     # double-buffered
    tm = int(min(max(tm, 8), 2048))
    tm -= tm % 8
    if max_tm is not None:                        # test hook: force small tiles
        tm = min(tm, max(8, max_tm - max_tm % 8))
    if tm >= M:
        tm = M                                    # single tile == full dim
    n_tiles = _cdiv(M, tm)

    # v7x: split the M loop across the two TensorCores (harmless serial loop
    # on single-core v5e/v6e).  Each split owns its own output row.
    num_splits = 2 if n_tiles >= 2 else 1
    tiles_per_core = _cdiv(n_tiles, num_splits)

    def m_index(c, i):
        # Clamp: when n_tiles is odd the second split has one duplicate step;
        # the kernel masks its contribution to zero (rows >= M).
        return (jnp.minimum(c * tiles_per_core + i, n_tiles - 1), 0)

    tm_pad = _round_up(tm, 8)
    vmem_need = (2 * tm_pad * N_l * 4       # Y (2 buffers)
                 + 4 * tm_pad * K_l * 4     # Db + Db0 (2 buffers each)
                 + fixed)
    vmem_limit = int(min(max(vmem_need, 32 << 20), budget))

    cost = pl.CostEstimate(
        flops=2 * M * K * N,
        transcendentals=0,
        bytes_accessed=4 * (M * N + 2 * M * K + K * N)
        + num_splits * 8 * 128 * 4,
    )

    out = pl.pallas_call(
        _make_kernel(M, tm, tiles_per_core),
        out_shape=jax.ShapeDtypeStruct((num_splits, 8, 128), f32),
        grid=(num_splits, tiles_per_core),
        in_specs=[
            pl.BlockSpec((tm, N), m_index),               # Y tile   (streamed)
            pl.BlockSpec((tm, K), m_index),               # Db tile  (streamed)
            pl.BlockSpec((K, N), lambda c, i: (0, 0)),    # alpha    (resident)
            pl.BlockSpec((tm, K), m_index),               # Db0 tile (streamed)
        ],
        out_specs=pl.BlockSpec((1, 8, 128), lambda c, i: (c, 0, 0)),
        compiler_params=pltpu.CompilerParams(
            dimension_semantics=("parallel", "arbitrary"),
            vmem_limit_bytes=vmem_limit,
        ),
        cost_estimate=cost,
    )(Y, Db, alpha, Db0)

    loss1 = jnp.sum(out[:, 0, 0])
    loss3 = jnp.sum(out[:, 0, 1])
    # ||alpha||_1 is tiny (K x N, not M-scaled): plain JAX in the wrapper so the
    # kernel never spends a pass on it (per perf review).
    loss2 = jnp.sum(jnp.abs(alpha))

    loss = loss1 + 0.1 * loss2 + 0.1 * loss3
    b = jnp.float32(M)
    return (loss / b, loss1 / b, loss2 / b, loss3 / b)


def _reference(Y, Db, alpha, Db0):
    resid = Y - Db @ alpha
    r1 = jnp.sum(jnp.abs(resid))
    r2 = jnp.sum(jnp.abs(alpha))
    r3 = jnp.sum(jnp.abs(Db - Db0))
    b = Y.shape[0]
    return ((r1 + 0.1 * r2 + 0.1 * r3) / b, r1 / b, r2 / b, r3 / b)


if __name__ == "__main__":
    key = jax.random.PRNGKey(0)
    kY, kDb, kA, kDb0 = jax.random.split(key, 4)

    # Small shapes consistent with the module: Y (M,N), Db (M,K), alpha (K,N).
    M, K, N = 16, 32, 8
    Y = jax.random.normal(kY, (M, N), dtype=jnp.float32)
    Db = jax.random.normal(kDb, (M, K), dtype=jnp.float32)
    alpha = jax.random.normal(kA, (K, N), dtype=jnp.float32)
    # TODO(synk): Db0 is an undefined module-level global in the PyTorch
    # source; it is passed as an explicit argument here.
    Db0 = Db + 0.05 * jax.random.normal(kDb0, (M, K), dtype=jnp.float32)

    # 1) Default path (single tile, single split).
    out = jax.block_until_ready(loss_all(Y, Db, alpha, Db0))
    for got, want in zip(out, _reference(Y, Db, alpha, Db0)):
        assert jnp.allclose(got, want, rtol=1e-4, atol=1e-4), (got, want)

    # 2) Forced multi-tile path: exercises streaming, remainder-row masking and
    #    the 2-way core split (odd tile count -> one clamped/masked duplicate).
    M2 = 20
    Y2 = jax.random.normal(kY, (M2, N), dtype=jnp.float32)
    Db2 = jax.random.normal(kDb, (M2, K), dtype=jnp.float32)
    Db02 = Db2 + 0.05 * jax.random.normal(kDb0, (M2, K), dtype=jnp.float32)
    out2 = jax.block_until_ready(loss_all(Y2, Db2, alpha, Db02, max_tm=8))
    for got, want in zip(out2, _reference(Y2, Db2, alpha, Db02)):
        assert jnp.allclose(got, want, rtol=1e-4, atol=1e-4), (got, want)

    print("KERNEL_OK")
</pallas_src>

<mosaic_0001>
module attributes {stable_mosaic.version = 11 : i64} {
  func.func @kernel(%arg0: i32, %arg1: i32, %arg2: memref<16x8xf32, #tpu.memory_space<vmem>>, %arg3: memref<16x32xf32, #tpu.memory_space<vmem>>, %arg4: memref<32x8xf32, #tpu.memory_space<vmem>>, %arg5: memref<16x32xf32, #tpu.memory_space<vmem>>, %arg6: memref<1x8x128xf32, #tpu.memory_space<vmem>>) attributes {dimension_semantics = [#tpu.dimension_semantics<parallel>, #tpu.dimension_semantics<arbitrary>], iteration_bounds = array<i64: 1, 1>, scalar_prefetch = 0 : i64, scratch_operands = 0 : i64, tpu.core_type = #tpu.core_type<tc>, window_params = [{transform_indices = @transform_0, window_bounds = array<i64: 16, 8>}, {transform_indices = @transform_1, window_bounds = array<i64: 16, 32>}, {pipeline_mode = #tpu.pipeline_mode<synchronous>, transform_indices = @transform_2, window_bounds = array<i64: 32, 8>}, {transform_indices = @transform_3, window_bounds = array<i64: 16, 32>}, {transform_indices = @transform_4, window_bounds = array<i64: 1, 8, 128>}]} {
    %c0_i32 = arith.constant 0 : i32
    %0 = arith.cmpi eq, %arg1, %c0_i32 : i32
    %1 = arith.extui %0 : i1 to i32
    %c0_i32_0 = arith.constant 0 : i32
    %2 = arith.cmpi ne, %1, %c0_i32_0 : i32
    scf.if %2 {
      %cst_24 = arith.constant 0.000000e+00 : f32
      %50 = vector.broadcast %cst_24 : f32 to vector<1x8x128xf32>
      %c0_25 = arith.constant 0 : index
      %c0_26 = arith.constant 0 : index
      %c0_27 = arith.constant 0 : index
      %51 = vector.load %arg6[%c0_25, %c0_26, %c0_27] : memref<1x8x128xf32, #tpu.memory_space<vmem>>, vector<1x8x128xf32>
      tpu.vector_store %arg6[%c0_25, %c0_26, %c0_27], %50 {strides = array<i32>} : memref<1x8x128xf32, #tpu.memory_space<vmem>>, vector<1x8x128xf32>,
    } else {
    }
    %c1_i32 = arith.constant 1 : i32
    %3 = arith.muli %arg0, %c1_i32 : i32
    %4 = arith.addi %3, %arg1 : i32
    %c16_i32 = arith.constant 16 : i32
    %5 = arith.muli %4, %c16_i32 : i32
    %6 = tpu.iota {dimensions = array<i32: 0>} : vector<16x1xi32>
    %7 = vector.broadcast %5 : i32 to vector<16x1xi32>
    %8 = arith.addi %7, %6 : vector<16x1xi32>
    %c16_i32_1 = arith.constant 16 : i32
    %9 = vector.broadcast %c16_i32_1 : i32 to vector<16x1xi32>
    %10 = arith.cmpi slt, %8, %9 : vector<16x1xi32>
    %c0 = arith.constant 0 : index
    %c0_2 = arith.constant 0 : index
    %11 = vector.load %arg3[%c0, %c0_2] : memref<16x32xf32, #tpu.memory_space<vmem>>, vector<16x32xf32>
    %c0_3 = arith.constant 0 : index
    %c0_4 = arith.constant 0 : index
    %12 = vector.load %arg4[%c0_3, %c0_4] : memref<32x8xf32, #tpu.memory_space<vmem>>, vector<32x8xf32>
    %cst = arith.constant dense<0.000000e+00> : vector<16x8xf32>
    %13 = tpu.matmul %11, %12, %cst {dimension_numbers = #tpu.dot_dimension_numbers<[1], [0], [0], [1], [0, 0, 1, 1], [], []>} : vector<16x32xf32>, vector<32x8xf32>, vector<16x8xf32> -> vector<16x8xf32>
    %c0_5 = arith.constant 0 : index
    %c0_6 = arith.constant 0 : index
    %14 = vector.load %arg2[%c0_5, %c0_6] : memref<16x8xf32, #tpu.memory_space<vmem>>, vector<16x8xf32>
    %15 = arith.subf %14, %13 : vector<16x8xf32>
    %16 = math.absf %15 : vector<16x8xf32>
    %cst_7 = arith.constant 0.000000e+00 : f32
    %17 = vector.shape_cast %10 : vector<16x1xi1> to vector<16x1xi1>
    %18 = vector.broadcast %17 : vector<16x1xi1> to vector<16x8xi1>
    %19 = vector.broadcast %cst_7 : f32 to vector<16x8xf32>
    %20 = arith.select %18, %16, %19 : vector<16x8xi1>, vector<16x8xf32>
    %21 = vector.shape_cast %20 : vector<16x8xf32> to vector<1x16x8xf32>
    %cst_8 = arith.constant dense<0.000000e+00> : vector<1xf32>
    %22 = vector.multi_reduction <add>, %21, %cst_8 [1, 2] : vector<1x16x8xf32> to vector<1xf32>
    %23 = vector.shape_cast %22 : vector<1xf32> to vector<1x1x1xf32>
    %24 = vector.extract %23[0, 0, 0] : f32 from vector<1x1x1xf32>
    %c0_9 = arith.constant 0 : index
    %c0_10 = arith.constant 0 : index
    %25 = vector.load %arg3[%c0_9, %c0_10] : memref<16x32xf32, #tpu.memory_space<vmem>>, vector<16x32xf32>
    %c0_11 = arith.constant 0 : index
    %c0_12 = arith.constant 0 : index
    %26 = vector.load %arg5[%c0_11, %c0_12] : memref<16x32xf32, #tpu.memory_space<vmem>>, vector<16x32xf32>
    %27 = arith.subf %25, %26 : vector<16x32xf32>
    %28 = math.absf %27 : vector<16x32xf32>
    %cst_13 = arith.constant 0.000000e+00 : f32
    %29 = vector.shape_cast %10 : vector<16x1xi1> to vector<16x1xi1>
    %30 = vector.broadcast %29 : vector<16x1xi1> to vector<16x32xi1>
    %31 = vector.broadcast %cst_13 : f32 to vector<16x32xf32>
    %32 = arith.select %30, %28, %31 : vector<16x32xi1>, vector<16x32xf32>
    %33 = vector.shape_cast %32 : vector<16x32xf32> to vector<1x16x32xf32>
    %cst_14 = arith.constant dense<0.000000e+00> : vector<1xf32>
    %34 = vector.multi_reduction <add>, %33, %cst_14 [1, 2] : vector<1x16x32xf32> to vector<1xf32>
    %35 = vector.shape_cast %34 : vector<1xf32> to vector<1x1x1xf32>
    %36 = vector.extract %35[0, 0, 0] : f32 from vector<1x1x1xf32>
    %37 = tpu.iota {dimensions = array<i32: 2>} : vector<1x8x128xi32>
    %c0_15 = arith.constant 0 : index
    %c0_16 = arith.constant 0 : index
    %c0_17 = arith.constant 0 : index
    %38 = vector.load %arg6[%c0_15, %c0_16, %c0_17] : memref<1x8x128xf32, #tpu.memory_space<vmem>>, vector<1x8x128xf32>
    %c0_i32_18 = arith.constant 0 : i32
    %39 = vector.broadcast %c0_i32_18 : i32 to vector<1x8x128xi32>
    %40 = arith.cmpi eq, %37, %39 : vector<1x8x128xi32>
    %c1_i32_19 = arith.constant 1 : i32
    %41 = vector.broadcast %c1_i32_19 : i32 to vector<1x8x128xi32>
    %42 = arith.cmpi eq, %37, %41 : vector<1x8x128xi32>
    %cst_20 = arith.constant 0.000000e+00 : f32
    %43 = vector.broadcast %36 : f32 to vector<1x8x128xf32>
    %44 = vector.broadcast %cst_20 : f32 to vector<1x8x128xf32>
    %45 = arith.select %42, %43, %44 : vector<1x8x128xi1>, vector<1x8x128xf32>
    %46 = vector.broadcast %24 : f32 to vector<1x8x128xf32>
    %47 = arith.select %40, %46, %45 : vector<1x8x128xi1>, vector<1x8x128xf32>
    %48 = arith.addf %38, %47 : vector<1x8x128xf32>
    %c0_21 = arith.constant 0 : index
    %c0_22 = arith.constant 0 : index
    %c0_23 = arith.constant 0 : index
    %49 = vector.load %arg6[%c0_21, %c0_22, %c0_23] : memref<1x8x128xf32, #tpu.memory_space<vmem>>, vector<1x8x128xf32>
    tpu.vector_store %arg6[%c0_21, %c0_22, %c0_23], %48 {strides = array<i32>} : memref<1x8x128xf32, #tpu.memory_space<vmem>>, vector<1x8x128xf32>,
    return
  }
  func.func @transform_0(%arg0: i32, %arg1: i32) -> (i32, i32) {
    %c1_i32 = arith.constant 1 : i32
    %0 = arith.muli %arg0, %c1_i32 : i32
    %1 = arith.addi %0, %arg1 : i32
    %c0_i32 = arith.constant 0 : i32
    %2 = arith.minsi %1, %c0_i32 : i32
    %c0_i32_0 = arith.constant 0 : i32
    %c0_i32_1 = arith.constant 0 : i32
    return %2, %c0_i32_0 : i32, i32
  }
  func.func @transform_1(%arg0: i32, %arg1: i32) -> (i32, i32) {
    %c1_i32 = arith.constant 1 : i32
    %0 = arith.muli %arg0, %c1_i32 : i32
    %1 = arith.addi %0, %arg1 : i32
    %c0_i32 = arith.constant 0 : i32
    %2 = arith.minsi %1, %c0_i32 : i32
    %c0_i32_0 = arith.constant 0 : i32
    %c0_i32_1 = arith.constant 0 : i32
    return %2, %c0_i32_0 : i32, i32
  }
  func.func @transform_2(%arg0: i32, %arg1: i32) -> (i32, i32) {
    %c0_i32 = arith.constant 0 : i32
    %c0_i32_0 = arith.constant 0 : i32
    %c0_i32_1 = arith.constant 0 : i32
    return %c0_i32, %c0_i32_0 : i32, i32
  }
  func.func @transform_3(%arg0: i32, %arg1: i32) -> (i32, i32) {
    %c1_i32 = arith.constant 1 : i32
    %0 = arith.muli %arg0, %c1_i32 : i32
    %1 = arith.addi %0, %arg1 : i32
    %c0_i32 = arith.constant 0 : i32
    %2 = arith.minsi %1, %c0_i32 : i32
    %c0_i32_0 = arith.constant 0 : i32
    %c0_i32_1 = arith.constant 0 : i32
    return %2, %c0_i32_0 : i32, i32
  }
  func.func @transform_4(%arg0: i32, %arg1: i32) -> (i32, i32, i32) {
    %c0_i32 = arith.constant 0 : i32
    %c0_i32_0 = arith.constant 0 : i32
    %c0_i32_1 = arith.constant 0 : i32
    return %arg0, %c0_i32, %c0_i32_0 : i32, i32, i32
  }
}

</mosaic_0001>

<bundles_post_ra>
// kernel: tpu_custom_call.1
= control target key start
LH: loop header
LB: loop body
LE: loop exit
PB: predicated region body
PF: predicated region fallthrough
CT: control target
= control target key end

     0   :  { %s352_s0 = inlined_call_operand.vmem [shape: f32[16,8], index: 0, kind: input, shape index: {}]   ;;  %s353_s1 = inlined_call_operand.vmem [shape: f32[16,32], index: 1, kind: input, shape index: {}]   ;;  %s354_s2 = inlined_call_operand.vmem [shape: f32[32,8], index: 2, kind: input, shape index: {}]   ;;  %s355_s3 = inlined_call_operand.vmem [shape: f32[16,32], index: 3, kind: input, shape index: {}]   ;;  %s356_s4 = inlined_call_operand.hbm [shape: f32[1,8,128], index: 4, kind: output, shape index: {}]  }
   0x1   :  { %v134_v0 = vld [vmem:[%s354_s2 + $0x18] sm:$0xff]  ;;  %v133_v1 = vld [vmem:[%s354_s2 + $0x10] sm:$0xff]  ;;  %v132_v2 = vld [vmem:[%s354_s2 + $0x8] sm:$0xff] }
   0x2   :  { %154 = vmatpush.msra.mxu0 %v134_v0  ;;  %257 = vmatpush.msra.mxu1 %v134_v0 }
   0x3   :  { %9 = vsyncpa [#allocation3], 0  ;;  %v131_v3 = vld [vmem:[%s354_s2] sm:$0xff]  ;;  %vm135_vm0 = vcmask 261120   ;;  %v130_v5 = vld [vmem:[%s353_s1 + $0x8] sm:$0xff]  ;;  %vm177_vm1 = vcmask 64512   ;;  %v210_v40 = vlaneseq }
   0x4   :  { %155 = vmatpush.msra.mxu0 %v133_v1  ;;  %258 = vmatpush.msra.mxu1 %v133_v1  ;;  %v129_v4 = vld [vmem:[%s353_s1] sm:$0xff]  ;;  %v191_v7 = vld [vmem:[%s355_s3 + $0x8] sm:$0xff]  ;;  %s293_s7 = smov [#allocation2]   ;;  %s228_s11 = sshll.u32 %s356_s4, 4  ;;  %s229_s11 = int_to_ptr.hbm [resolvable:$true] %s228_s11 }
   0x5   :  { %v190_v6 = vld [vmem:[%s355_s3] sm:$0xff]  ;;  %v193_v9 = vsub.f32 %v130_v5, %v191_v7  ;;  %v166_v16 = vld [vmem:[%s352_s0 + $0x8] sm:$0xff]  ;;  %v211_v41 = vand.u32 127, %v210_v40  ;;  %s226_s8 = sshll.u32 %s293_s7, 4  ;;  %s227_s8 = int_to_ptr.vmem [resolvable:$true] %s226_s8 }
   0x6   :  { %156 = vmatpush.msra.mxu0 %v132_v2  ;;  %259 = vmatpush.msra.mxu1 %v132_v2  ;;  %v192_v8 = vsub.f32 %v129_v4, %v190_v6  ;;  %v165_v15 = vld [vmem:[%s352_s0] sm:$0xff] }
   0x7   :  { %v195_v11 = vand.u32 2147483647, %v193_v9  ;;  %vm214_vm2 = vcmp.eq.s32.totalorder %v211_v41, 1  ;;  %vm213_vm3 = vcmp.eq.s32.totalorder %v211_v41, 0 }
   0x8   :  { %157 = vmatpush.msra.mxu0 %v131_v3  ;;  %260 = vmatpush.msra.mxu1 %v131_v3  ;;  %v194_v10 = vand.u32 2147483647, %v192_v8 }
   0x9   :  { %255 = vmatmul.msk.f32.vlgmr.msra.gmra.mxu0 %vm135_vm0, %v129_v4  ;;  %256 = vmatmul.msk.f32.vlgmr.msra.gmra.mxu1 %vm135_vm0, %v130_v5  ;;  %v199_v13 = vsel %vm135_vm0, %v195_v11, 0.0 }
   0xa   :  { %v198_v12 = vsel %vm135_vm0, %v194_v10, 0.0 }
   0xb   :  { %v200_v14 = vadd.f32 %v199_v13, %v198_v12 }
  0x86   :  { %v159_v17 = vpop.f32.mrf.mxu0  ;;  %v162_v18 = vpop.f32.mrf.mxu1 }
  0x87   :  { %v167_v19 = vsub.f32 %v165_v15, %v159_v17  ;;  %v168_v20 = vsub.f32 %v166_v16, %v162_v18 }
  0x89   :  { %v169_v21 = vand.u32 2147483647, %v167_v19  ;;  %v170_v22 = vand.u32 2147483647, %v168_v20 }
  0x8b   :  { %v178_v23 = vsel %vm177_vm1, %v169_v21, 0.0  ;;  %v179_v24 = vsel %vm177_vm1, %v170_v22, 0.0 }
  0x8c   :  { %v180_v25 = vadd.f32 %v179_v24, %v178_v23 }
  0x8e   :  { %181 = vadd.xlane.f32.xlu0 %v180_v25 }
  0x96   :  { %201 = vadd.xlane.f32.xlu0 %v200_v14 }
 0x101   :  { %v182_v26 = vpop.xlane.xlu0 %181 }
 0x102   :  { %v183_v27 = vrot.slane %v182_v26, 4 }
 0x104   :  { %v184_v28 = vadd.f32 %v183_v27, %v182_v26 }
 0x106   :  { %v185_v29 = vrot.slane %v184_v28, 2 }
 0x108   :  { %v186_v30 = vadd.f32 %v185_v29, %v184_v28 }
 0x109   :  { %v202_v31 = vpop.xlane.xlu0 %201 }
 0x10a   :  { %v203_v32 = vrot.slane %v202_v31, 4  ;;  %v187_v33 = vrot.slane %v186_v30, 1 }
 0x10c   :  { %v204_v34 = vadd.f32 %v203_v32, %v202_v31  ;;  %v188_v35 = vadd.f32 %v187_v33, %v186_v30 }
 0x10e   :  { %v205_v36 = vrot.slane %v204_v34, 2  ;;  %261 = vpush %v188_v35 }
 0x110   :  { %v206_v37 = vadd.f32 %v205_v36, %v204_v34 }
 0x112   :  { %v207_v38 = vrot.slane %v206_v37, 1 }
 0x114   :  { %v208_v39 = vadd.f32 %v207_v38, %v206_v37 }
 0x116   :  { %263 = vpush %v208_v39 }
 0x13f   :  { %s262_s0 = spop %261 }
 0x140   :  { %v217_v43 = vstv %s262_s0 }
 0x147   :  { %s264_s3 = spop %263 }
 0x148   :  { %v215_v42 = vstv %s264_s3 }
 0x149   :  { %v216_v44 = vsel %vm214_vm2, %v215_v42, 0.0 }
 0x14a   :  { %v218_v45 = vsel %vm213_vm3, %v217_v43, %v216_v44 }
 0x14b   :  { %220 = vst [vmem:[#allocation2] sm:$0xff] %v218_v45 }
 0x14c   :  { %231 = dma.vmem_to_hbm [thread:$0]  %s227_s8, 128, %s229_s11, [#allocation3]  }
 0x14d   :  { %291 = dma.done.wait [#allocation3], 128  }
 0x14e   :  { %292 = vsyncadd [#allocation3], 4294967168 }
 0x14f   :  { %236 = vsyncpa [#allocation3], 1 }

</bundles_post_ra>
